<compile_context>
chip_gen: v5e
topology: v5e:2x2
jax: 0.10.0
libtpu: 0.0.40
codegen_flags: <defaults>
</compile_context>

<pallas_src>
import jax
import jax.numpy as jnp
from jax.experimental import pallas as pl
from jax.experimental.pallas import tpu as pltpu

# Layer dimensions of the autoencoder (encoder then decoder).
DIMS = [784, 128, 64, 32, 64, 128, 784]


def _sae_kernel(x_ref,
                w1_ref, b1_ref, w2_ref, b2_ref, w3_ref, b3_ref,
                w4_ref, b4_ref, w5_ref, b5_ref, w6_ref, b6_ref,
                o_ref):
    """Fused 6-layer MLP: ReLU x5 then Tanh. MXU matmuls, f32 accumulation."""
    cdt = w1_ref.dtype              # matmul-operand dtype: f32, or bf16 fast path
    h = x_ref[...].astype(cdt)      # cast once on load; h stays in cdt between layers

    def layer(h, w_ref, b_ref, act):
        # MXU matmul with f32 accumulation; bias add + activation stay in f32
        # on the VPU/EUP, then the result is narrowed back to the compute
        # dtype so the (tile, width) intermediate isn't carried as full f32.
        y = jnp.dot(h, w_ref[...], preferred_element_type=jnp.float32) + b_ref[...]
        return act(y).astype(cdt)

    relu = lambda t: jnp.maximum(t, 0.0)
    # Encoder
    h = layer(h, w1_ref, b1_ref, relu)
    h = layer(h, w2_ref, b2_ref, relu)
    h = layer(h, w3_ref, b3_ref, relu)
    # Decoder
    h = layer(h, w4_ref, b4_ref, relu)
    h = layer(h, w5_ref, b5_ref, relu)
    h = layer(h, w6_ref, b6_ref, jnp.tanh)

    o_ref[...] = h.astype(o_ref.dtype)


def _pick_batch_tile(B, requested=None):
    """Batch tile: >=2 grid steps when possible (v7x megacore), multiple of 8."""
    if requested is not None:
        tile = requested
    else:
        # Cap at 256 (512 for very large batches, to amortize ~0.35us/step
        # overhead on v5e/v6e), but aim for at least 2 grid steps.
        cap = 512 if B >= 2048 else 256
        tile = min(cap, ((pl.cdiv(B, 2) + 7) // 8) * 8)
    if tile >= B:
        return B                      # one block spanning the full batch dim (legal)
    return max(8, (tile // 8) * 8)    # partial-batch block: must be a multiple of 8


def sparse_autoencoder_l1(x, params, *, batch_tile=None, use_bf16=False):
    """x: (B, 784) float.  params: list of 6 (W (in,out), b (1,out)) pairs.

    use_bf16=True runs the MXU in bf16 (f32 accumulation) and keeps inter-layer
    activations in bf16 — the fast path on v6e/v7x — but is NOT bit-faithful to
    the f32 PyTorch module (~1e-2 level error); default stays f32.
    """
    B, d_in = x.shape
    assert d_in == DIMS[0]

    bt = _pick_batch_tile(B, batch_tile)
    grid = (pl.cdiv(B, bt),)          # ragged last block handled by OOB masking

    wdt = jnp.bfloat16 if use_bf16 else jnp.float32
    flat_params = []
    for w, b in params:
        flat_params.append(w.astype(wdt))           # matmul operand (maybe bf16)
        flat_params.append(b.astype(jnp.float32))   # bias add stays f32

    # Advisory cost hint so XLA schedules/overlaps the custom call well.
    matmul_flops = 2 * B * sum(DIMS[i] * DIMS[i + 1] for i in range(6))
    param_bytes = sum(int(p.size) * p.dtype.itemsize for p in flat_params)
    act_bytes = int(x.size) * x.dtype.itemsize + B * DIMS[-1] * x.dtype.itemsize
    cost = pl.CostEstimate(
        flops=matmul_flops,
        transcendentals=B * DIMS[-1],               # tanh
        bytes_accessed=act_bytes + param_bytes,
    )

    # x / out: tile the batch dim; last dim = full 784 (legal: equals array dim).
    # weights / biases: block-invariant index_map -> loaded once, kept resident.
    in_specs = [pl.BlockSpec((bt, d_in), lambda i: (i, 0))]
    in_specs += [pl.BlockSpec(p.shape, lambda i: (0, 0)) for p in flat_params]

    return pl.pallas_call(
        _sae_kernel,
        out_shape=jax.ShapeDtypeStruct((B, DIMS[-1]), x.dtype),
        grid_spec=pltpu.PrefetchScalarGridSpec(
            num_scalar_prefetch=0,
            grid=grid,
            in_specs=in_specs,
            out_specs=pl.BlockSpec((bt, DIMS[-1]), lambda i: (i, 0)),
        ),
        compiler_params=pltpu.CompilerParams(
            dimension_semantics=("parallel",),          # shard batch steps across TCs
            # Not a binding constraint (~6-8 MiB actually used at tile=256);
            # kept only as a safe ceiling that still fits v7x's 64 MiB VMEM.
            vmem_limit_bytes=48 * 1024 * 1024,
        ),
        cost_estimate=cost,
    )(x, *flat_params)


def init_params(key):
    """Deterministic init mirroring nn.Linear default (uniform +-1/sqrt(in))."""
    params = []
    for layer in range(6):
        fan_in, fan_out = DIMS[layer], DIMS[layer + 1]
        key, kw, kb = jax.random.split(key, 3)
        bound = 1.0 / jnp.sqrt(jnp.float32(fan_in))
        w = jax.random.uniform(kw, (fan_in, fan_out), jnp.float32, -bound, bound)
        b = jax.random.uniform(kb, (1, fan_out), jnp.float32, -bound, bound)
        params.append((w, b))
    return params


def reference_forward(x, params):
    h = x
    for i, (w, b) in enumerate(params):
        h = h @ w + b
        h = jnp.tanh(h) if i == 5 else jnp.maximum(h, 0.0)
    return h


if __name__ == "__main__":
    key = jax.random.PRNGKey(0)
    kx, kp = jax.random.split(key)

    # Small batch; deliberately NOT a multiple of the chosen tile (16) so the
    # ragged last grid step / out-of-bounds masking path is exercised.
    B = 20
    x = jax.random.normal(kx, (B, 784), jnp.float32)
    params = init_params(kp)

    # f32 path: bit-faithful to the PyTorch module semantics.
    out = jax.block_until_ready(sparse_autoencoder_l1(x, params))
    ref = reference_forward(x, params)
    assert out.shape == (B, 784)
    assert jnp.allclose(out, ref, atol=1e-5, rtol=1e-5), "f32 mismatch vs reference"

    # bf16 matmul / bf16 inter-layer activations (v6e/v7x fast path): looser tol.
    out_bf = jax.block_until_ready(sparse_autoencoder_l1(x, params, use_bf16=True))
    assert jnp.allclose(out_bf, ref, atol=1e-1, rtol=1e-1), "bf16 mismatch vs reference"

    print("KERNEL_OK")
</pallas_src>

<mosaic_0001>
module attributes {stable_mosaic.version = 11 : i64} {
  func.func @_sae_kernel(%arg0: i32, %arg1: memref<16x784xf32, #tpu.memory_space<vmem>>, %arg2: memref<784x128xf32, #tpu.memory_space<vmem>>, %arg3: memref<1x128xf32, #tpu.memory_space<vmem>>, %arg4: memref<128x64xf32, #tpu.memory_space<vmem>>, %arg5: memref<1x64xf32, #tpu.memory_space<vmem>>, %arg6: memref<64x32xf32, #tpu.memory_space<vmem>>, %arg7: memref<1x32xf32, #tpu.memory_space<vmem>>, %arg8: memref<32x64xf32, #tpu.memory_space<vmem>>, %arg9: memref<1x64xf32, #tpu.memory_space<vmem>>, %arg10: memref<64x128xf32, #tpu.memory_space<vmem>>, %arg11: memref<1x128xf32, #tpu.memory_space<vmem>>, %arg12: memref<128x784xf32, #tpu.memory_space<vmem>>, %arg13: memref<1x784xf32, #tpu.memory_space<vmem>>, %arg14: memref<16x784xf32, #tpu.memory_space<vmem>>) attributes {dimension_semantics = [#tpu.dimension_semantics<parallel>], iteration_bounds = array<i64: 2>, scalar_prefetch = 0 : i64, scratch_operands = 0 : i64, tpu.core_type = #tpu.core_type<tc>, window_params = [{transform_indices = @transform_0, window_bounds = array<i64: 16, 784>}, {pipeline_mode = #tpu.pipeline_mode<synchronous>, transform_indices = @transform_1, window_bounds = array<i64: 784, 128>}, {pipeline_mode = #tpu.pipeline_mode<synchronous>, transform_indices = @transform_2, window_bounds = array<i64: 1, 128>}, {pipeline_mode = #tpu.pipeline_mode<synchronous>, transform_indices = @transform_3, window_bounds = array<i64: 128, 64>}, {pipeline_mode = #tpu.pipeline_mode<synchronous>, transform_indices = @transform_4, window_bounds = array<i64: 1, 64>}, {pipeline_mode = #tpu.pipeline_mode<synchronous>, transform_indices = @transform_5, window_bounds = array<i64: 64, 32>}, {pipeline_mode = #tpu.pipeline_mode<synchronous>, transform_indices = @transform_6, window_bounds = array<i64: 1, 32>}, {pipeline_mode = #tpu.pipeline_mode<synchronous>, transform_indices = @transform_7, window_bounds = array<i64: 32, 64>}, {pipeline_mode = #tpu.pipeline_mode<synchronous>, transform_indices = @transform_8, window_bounds = array<i64: 1, 64>}, {pipeline_mode = #tpu.pipeline_mode<synchronous>, transform_indices = @transform_9, window_bounds = array<i64: 64, 128>}, {pipeline_mode = #tpu.pipeline_mode<synchronous>, transform_indices = @transform_10, window_bounds = array<i64: 1, 128>}, {pipeline_mode = #tpu.pipeline_mode<synchronous>, transform_indices = @transform_11, window_bounds = array<i64: 128, 784>}, {pipeline_mode = #tpu.pipeline_mode<synchronous>, transform_indices = @transform_12, window_bounds = array<i64: 1, 784>}, {transform_indices = @transform_13, window_bounds = array<i64: 16, 784>}]} {
    %c0 = arith.constant 0 : index
    %c0_0 = arith.constant 0 : index
    %0 = vector.load %arg1[%c0, %c0_0] : memref<16x784xf32, #tpu.memory_space<vmem>>, vector<16x784xf32>
    %c0_1 = arith.constant 0 : index
    %c0_2 = arith.constant 0 : index
    %1 = vector.load %arg2[%c0_1, %c0_2] : memref<784x128xf32, #tpu.memory_space<vmem>>, vector<784x128xf32>
    %cst = arith.constant dense<0.000000e+00> : vector<16x128xf32>
    %2 = tpu.matmul %0, %1, %cst {dimension_numbers = #tpu.dot_dimension_numbers<[1], [0], [0], [1], [0, 0, 1, 1], [], []>} : vector<16x784xf32>, vector<784x128xf32>, vector<16x128xf32> -> vector<16x128xf32>
    %c0_3 = arith.constant 0 : index
    %c0_4 = arith.constant 0 : index
    %3 = vector.load %arg3[%c0_3, %c0_4] : memref<1x128xf32, #tpu.memory_space<vmem>>, vector<1x128xf32>
    %4 = vector.broadcast %3 : vector<1x128xf32> to vector<16x128xf32>
    %5 = arith.addf %2, %4 : vector<16x128xf32>
    %cst_5 = arith.constant 0.000000e+00 : f32
    %6 = vector.broadcast %cst_5 : f32 to vector<16x128xf32>
    %7 = arith.maximumf %5, %6 : vector<16x128xf32>
    %c0_6 = arith.constant 0 : index
    %c0_7 = arith.constant 0 : index
    %8 = vector.load %arg4[%c0_6, %c0_7] : memref<128x64xf32, #tpu.memory_space<vmem>>, vector<128x64xf32>
    %cst_8 = arith.constant dense<0.000000e+00> : vector<16x64xf32>
    %9 = tpu.matmul %7, %8, %cst_8 {dimension_numbers = #tpu.dot_dimension_numbers<[1], [0], [0], [1], [0, 0, 1, 1], [], []>} : vector<16x128xf32>, vector<128x64xf32>, vector<16x64xf32> -> vector<16x64xf32>
    %c0_9 = arith.constant 0 : index
    %c0_10 = arith.constant 0 : index
    %10 = vector.load %arg5[%c0_9, %c0_10] : memref<1x64xf32, #tpu.memory_space<vmem>>, vector<1x64xf32>
    %11 = vector.broadcast %10 : vector<1x64xf32> to vector<16x64xf32>
    %12 = arith.addf %9, %11 : vector<16x64xf32>
    %cst_11 = arith.constant 0.000000e+00 : f32
    %13 = vector.broadcast %cst_11 : f32 to vector<16x64xf32>
    %14 = arith.maximumf %12, %13 : vector<16x64xf32>
    %c0_12 = arith.constant 0 : index
    %c0_13 = arith.constant 0 : index
    %15 = vector.load %arg6[%c0_12, %c0_13] : memref<64x32xf32, #tpu.memory_space<vmem>>, vector<64x32xf32>
    %cst_14 = arith.constant dense<0.000000e+00> : vector<16x32xf32>
    %16 = tpu.matmul %14, %15, %cst_14 {dimension_numbers = #tpu.dot_dimension_numbers<[1], [0], [0], [1], [0, 0, 1, 1], [], []>} : vector<16x64xf32>, vector<64x32xf32>, vector<16x32xf32> -> vector<16x32xf32>
    %c0_15 = arith.constant 0 : index
    %c0_16 = arith.constant 0 : index
    %17 = vector.load %arg7[%c0_15, %c0_16] : memref<1x32xf32, #tpu.memory_space<vmem>>, vector<1x32xf32>
    %18 = vector.broadcast %17 : vector<1x32xf32> to vector<16x32xf32>
    %19 = arith.addf %16, %18 : vector<16x32xf32>
    %cst_17 = arith.constant 0.000000e+00 : f32
    %20 = vector.broadcast %cst_17 : f32 to vector<16x32xf32>
    %21 = arith.maximumf %19, %20 : vector<16x32xf32>
    %c0_18 = arith.constant 0 : index
    %c0_19 = arith.constant 0 : index
    %22 = vector.load %arg8[%c0_18, %c0_19] : memref<32x64xf32, #tpu.memory_space<vmem>>, vector<32x64xf32>
    %cst_20 = arith.constant dense<0.000000e+00> : vector<16x64xf32>
    %23 = tpu.matmul %21, %22, %cst_20 {dimension_numbers = #tpu.dot_dimension_numbers<[1], [0], [0], [1], [0, 0, 1, 1], [], []>} : vector<16x32xf32>, vector<32x64xf32>, vector<16x64xf32> -> vector<16x64xf32>
    %c0_21 = arith.constant 0 : index
    %c0_22 = arith.constant 0 : index
    %24 = vector.load %arg9[%c0_21, %c0_22] : memref<1x64xf32, #tpu.memory_space<vmem>>, vector<1x64xf32>
    %25 = vector.broadcast %24 : vector<1x64xf32> to vector<16x64xf32>
    %26 = arith.addf %23, %25 : vector<16x64xf32>
    %cst_23 = arith.constant 0.000000e+00 : f32
    %27 = vector.broadcast %cst_23 : f32 to vector<16x64xf32>
    %28 = arith.maximumf %26, %27 : vector<16x64xf32>
    %c0_24 = arith.constant 0 : index
    %c0_25 = arith.constant 0 : index
    %29 = vector.load %arg10[%c0_24, %c0_25] : memref<64x128xf32, #tpu.memory_space<vmem>>, vector<64x128xf32>
    %cst_26 = arith.constant dense<0.000000e+00> : vector<16x128xf32>
    %30 = tpu.matmul %28, %29, %cst_26 {dimension_numbers = #tpu.dot_dimension_numbers<[1], [0], [0], [1], [0, 0, 1, 1], [], []>} : vector<16x64xf32>, vector<64x128xf32>, vector<16x128xf32> -> vector<16x128xf32>
    %c0_27 = arith.constant 0 : index
    %c0_28 = arith.constant 0 : index
    %31 = vector.load %arg11[%c0_27, %c0_28] : memref<1x128xf32, #tpu.memory_space<vmem>>, vector<1x128xf32>
    %32 = vector.broadcast %31 : vector<1x128xf32> to vector<16x128xf32>
    %33 = arith.addf %30, %32 : vector<16x128xf32>
    %cst_29 = arith.constant 0.000000e+00 : f32
    %34 = vector.broadcast %cst_29 : f32 to vector<16x128xf32>
    %35 = arith.maximumf %33, %34 : vector<16x128xf32>
    %c0_30 = arith.constant 0 : index
    %c0_31 = arith.constant 0 : index
    %36 = vector.load %arg12[%c0_30, %c0_31] : memref<128x784xf32, #tpu.memory_space<vmem>>, vector<128x784xf32>
    %cst_32 = arith.constant dense<0.000000e+00> : vector<16x784xf32>
    %37 = tpu.matmul %35, %36, %cst_32 {dimension_numbers = #tpu.dot_dimension_numbers<[1], [0], [0], [1], [0, 0, 1, 1], [], []>} : vector<16x128xf32>, vector<128x784xf32>, vector<16x784xf32> -> vector<16x784xf32>
    %c0_33 = arith.constant 0 : index
    %c0_34 = arith.constant 0 : index
    %38 = vector.load %arg13[%c0_33, %c0_34] : memref<1x784xf32, #tpu.memory_space<vmem>>, vector<1x784xf32>
    %39 = vector.broadcast %38 : vector<1x784xf32> to vector<16x784xf32>
    %40 = arith.addf %37, %39 : vector<16x784xf32>
    %41 = math.tanh %40 : vector<16x784xf32>
    %c0_35 = arith.constant 0 : index
    %c0_36 = arith.constant 0 : index
    %42 = vector.load %arg14[%c0_35, %c0_36] : memref<16x784xf32, #tpu.memory_space<vmem>>, vector<16x784xf32>
    tpu.vector_store %arg14[%c0_35, %c0_36], %41 {strides = array<i32>} : memref<16x784xf32, #tpu.memory_space<vmem>>, vector<16x784xf32>,
    return
  }
  func.func @transform_0(%arg0: i32) -> (i32, i32) {
    %c0_i32 = arith.constant 0 : i32
    %c0_i32_0 = arith.constant 0 : i32
    return %arg0, %c0_i32 : i32, i32
  }
  func.func @transform_1(%arg0: i32) -> (i32, i32) {
    %c0_i32 = arith.constant 0 : i32
    %c0_i32_0 = arith.constant 0 : i32
    %c0_i32_1 = arith.constant 0 : i32
    return %c0_i32, %c0_i32_0 : i32, i32
  }
  func.func @transform_2(%arg0: i32) -> (i32, i32) {
    %c0_i32 = arith.constant 0 : i32
    %c0_i32_0 = arith.constant 0 : i32
    %c0_i32_1 = arith.constant 0 : i32
    return %c0_i32, %c0_i32_0 : i32, i32
  }
  func.func @transform_3(%arg0: i32) -> (i32, i32) {
    %c0_i32 = arith.constant 0 : i32
    %c0_i32_0 = arith.constant 0 : i32
    %c0_i32_1 = arith.constant 0 : i32
    return %c0_i32, %c0_i32_0 : i32, i32
  }
  func.func @transform_4(%arg0: i32) -> (i32, i32) {
    %c0_i32 = arith.constant 0 : i32
    %c0_i32_0 = arith.constant 0 : i32
    %c0_i32_1 = arith.constant 0 : i32
    return %c0_i32, %c0_i32_0 : i32, i32
  }
  func.func @transform_5(%arg0: i32) -> (i32, i32) {
    %c0_i32 = arith.constant 0 : i32
    %c0_i32_0 = arith.constant 0 : i32
    %c0_i32_1 = arith.constant 0 : i32
    return %c0_i32, %c0_i32_0 : i32, i32
  }
  func.func @transform_6(%arg0: i32) -> (i32, i32) {
    %c0_i32 = arith.constant 0 : i32
    %c0_i32_0 = arith.constant 0 : i32
    %c0_i32_1 = arith.constant 0 : i32
    return %c0_i32, %c0_i32_0 : i32, i32
  }
  func.func @transform_7(%arg0: i32) -> (i32, i32) {
    %c0_i32 = arith.constant 0 : i32
    %c0_i32_0 = arith.constant 0 : i32
    %c0_i32_1 = arith.constant 0 : i32
    return %c0_i32, %c0_i32_0 : i32, i32
  }
  func.func @transform_8(%arg0: i32) -> (i32, i32) {
    %c0_i32 = arith.constant 0 : i32
    %c0_i32_0 = arith.constant 0 : i32
    %c0_i32_1 = arith.constant 0 : i32
    return %c0_i32, %c0_i32_0 : i32, i32
  }
  func.func @transform_9(%arg0: i32) -> (i32, i32) {
    %c0_i32 = arith.constant 0 : i32
    %c0_i32_0 = arith.constant 0 : i32
    %c0_i32_1 = arith.constant 0 : i32
    return %c0_i32, %c0_i32_0 : i32, i32
  }
  func.func @transform_10(%arg0: i32) -> (i32, i32) {
    %c0_i32 = arith.constant 0 : i32
    %c0_i32_0 = arith.constant 0 : i32
    %c0_i32_1 = arith.constant 0 : i32
    return %c0_i32, %c0_i32_0 : i32, i32
  }
  func.func @transform_11(%arg0: i32) -> (i32, i32) {
    %c0_i32 = arith.constant 0 : i32
    %c0_i32_0 = arith.constant 0 : i32
    %c0_i32_1 = arith.constant 0 : i32
    return %c0_i32, %c0_i32_0 : i32, i32
  }
  func.func @transform_12(%arg0: i32) -> (i32, i32) {
    %c0_i32 = arith.constant 0 : i32
    %c0_i32_0 = arith.constant 0 : i32
    %c0_i32_1 = arith.constant 0 : i32
    return %c0_i32, %c0_i32_0 : i32, i32
  }
  func.func @transform_13(%arg0: i32) -> (i32, i32) {
    %c0_i32 = arith.constant 0 : i32
    %c0_i32_0 = arith.constant 0 : i32
    return %arg0, %c0_i32 : i32, i32
  }
}

</mosaic_0001>

<bundles_post_ra>
// kernel: tpu_custom_call.1
= control target key start
LH: loop header
LB: loop body
LE: loop exit
PB: predicated region body
PF: predicated region fallthrough
CT: control target
= control target key end

     0   :  { %s2513_s0 = inlined_call_operand.vmem [shape: f32[20,784], index: 0, kind: input, shape index: {}]   ;;  %s2514_s1 = inlined_call_operand.vmem [shape: f32[784,128], index: 1, kind: input, shape index: {}]   ;;  %s2515_s2 = inlined_call_operand.vmem [shape: f32[1,128], index: 2, kind: input, shape index: {}]   ;;  %s2516_s3 = inlined_call_operand.vmem [shape: f32[128,64], index: 3, kind: input, shape index: {}]   ;;  %s2517_s4 = inlined_call_operand.vmem [shape: f32[1,64], index: 4, kind: input, shape index: {}]   ;;  %s2518_s5 = inlined_call_operand.vmem [shape: f32[64,32], index: 5, kind: input, shape index: {}]   ;;  %s2519_s6 = inlined_call_operand.vmem [shape: f32[1,32], index: 6, kind: input, shape index: {}]   ;;  %s2520_s7 = inlined_call_operand.vmem [shape: f32[32,64], index: 7, kind: input, shape index: {}]   ;;  %s2521_s8 = inlined_call_operand.vmem [shape: f32[1,64], index: 8, kind: input, shape index: {}]   ;;  %s2522_s9 = inlined_call_operand.vmem [shape: f32[64,128], index: 9, kind: input, shape index: {}]   ;;  %s2523_s10 = inlined_call_operand.vmem [shape: f32[1,128], index: 10, kind: input, shape index: {}]   ;;  %s2524_s11 = inlined_call_operand.vmem [shape: f32[128,784], index: 11, kind: input, shape index: {}]   ;;  %s2525_s12 = inlined_call_operand.vmem [shape: f32[1,784], index: 12, kind: input, shape index: {}]   ;;  %s2526_s13 = inlined_call_operand.hbm [shape: f32[20,784], index: 13, kind: output, shape index: {}]  }
   0x1   :  { %2532 = sst [smem:[#allocation10_spill]] %s2513_s0 }
   0x2   :  { %18 = vsyncpa [#allocation3], 0 }
   0x3   :  { %20 = vsyncpa [#allocation3 + $0x1], 0  ;;  %s1584_s25 = smov 0   ;;  %s1586_s26 = smov 0  }
   0x4   :  { %s1588_s27 = smov 0   ;;  %s1590_s28 = smov 0  }
   0x5 LB: > { %2533 = sst [smem:[#allocation5_spill]] %s1497_s25  ;;  %s1605_s29 = sadd.s32 4294967295, %s1509_s28   ;;  %s1509_s28 = sphi %s1590_s28, %s2544_s28   ;;  %s1505_s27 = sphi %s1588_s27, %s2546_s27   ;;  %s1501_s26 = sphi %s1586_s26, %s2548_s26   ;;  %s1497_s25 = sphi %s1584_s25, %s2547_s25  }
   0x6   : > { %2534 = sst [smem:[#allocation6_spill]] %s1505_s27  ;;  %s1337_s30 = sadd.s32 4294967294, %s1509_s28  }
   0x7   : > { %s1609_s14 = sadd.s32 1, %s1509_s28   ;;  %s311_s15 = sadd.s32 1, %s1505_s27 }
   0x8   : > { %2535 = sst [smem:[#allocation7_spill]] %s1609_s14  ;;  %s308_s16 = ssub.s32 %s1509_s28, %s1609_s14 }
   0x9   : > { %p321_p0 = scmp.ne.s32.totalorder %s1505_s27, %s1501_s26  ;;  %p309_p1 = scmp.eq.s32.totalorder %s308_s16, 0 }
   0xa   : > { %p322_p2 = scmp.eq.s32.totalorder %s1605_s29, 1  ;;  %p327_p3 = scmp.ne.s32.totalorder %s1501_s26, %s1497_s25 }
   0xb   : > { %p328_p4 = scmp.eq.s32.totalorder %s1337_s30, 1  ;;  %p1340_p7 = scmp.ge.s32.totalorder %s1509_s28, 1 }
   0xc   : > { %s1620_s17 = scalar_select %p309_p1, %s1505_s27, %s311_s15  }
   0xd   : > { %p1622_p5 = por %p322_p2, %p321_p0  ;;  %p1626_p6 = por %p328_p4, %p327_p3 }
   0xe   : > { %2536 = sst [smem:[#allocation8_spill]] %s1620_s17  ;;  %p402_p8 = scmp.lt.s32.totalorder %s1509_s28, 3 }
   0xf   : > { %s2538_s19 = scalar_select %p1626_p6, 1, 0 }
  0x10   : > { %p403_p9 = pnand %p1340_p7, %p402_p8 }
  0x11   : > { %2539 = sst [smem:[#allocation9_spill]] %s2538_s19  ;;  %s1747_s15 = sshll.u32 (!%p403_p9), %s1605_s29, 1 }
  0x12   : > { %406 = sbr.rel (%p403_p9) target bundleno = 956 (0x3bc), region = 72  ;;  %p458_p10 = scmp.lt.s32.totalorder (!%p403_p9), %s1747_s15, 2 }
  0x13   : > { %s2540_s0 = sld [smem:[#allocation10_spill]] (!%p403_p9) }
  0x17   : > { %v504_v0 = vld [vmem:[%s2514_s1 + $0x78] sm:$0xff]  ;;  %v503_v1 = vld [vmem:[%s2514_s1 + $0x70] sm:$0xff]  ;;  %v502_v4 = vld [vmem:[%s2514_s1 + $0x68] sm:$0xff]  ;;  %s1795_s24 = scalar_select %p458_p10, %s1747_s15, 2  ;;  %vm591_vm0 = vcmask 130048   ;;  %vm818_vm1 = vcmask 523264  }
  0x18   : > { %v520_v2 = vld [vmem:[%s2514_s1 + $0xf8] sm:$0xff]  ;;  %598 = vmatpush.msra.mxu0 %v504_v0  ;;  %v519_v3 = vld [vmem:[%s2514_s1 + $0xf0] sm:$0xff]  ;;  %v518_v5 = vld [vmem:[%s2514_s1 + $0xe8] sm:$0xff]  ;;  %vm858_vm2 = vcmask 261120   ;;  %s1259_s27 = ssub.s32 (%p1622_p5), 3, %s1747_s15 }
  0x19   : > { %621 = vmatpush.msra.mxu1 %v520_v2  ;;  %v501_v6 = vld [vmem:[%s2514_s1 + $0x60] sm:$0xff]  ;;  %v536_v8 = vld [vmem:[%s2514_s1 + $0x178] sm:$0xff]  ;;  %v535_v9 = vld [vmem:[%s2514_s1 + $0x170] sm:$0xff]  ;;  %s1361_s22 = smul.u32 56, %s1795_s24  ;;  %s449_s24 = sand.u32 1, %s1501_s26  }
  0x1a   : > { %599 = vmatpush.msra.mxu0 %v503_v1  ;;  %v517_v7 = vld [vmem:[%s2514_s1 + $0xe0] sm:$0xff]  ;;  %v552_v10 = vld [vmem:[%s2514_s1 + $0x1f8] sm:$0xff]  ;;  %644 = vmatpush.msra.mxu2 %v536_v8  ;;  %v534_v13 = vld [vmem:[%s2514_s1 + $0x168] sm:$0xff]  ;;  %s1360_s23 = smul.u32 112, %s449_s24  ;;  %s2455_s16 = scalar_lea.sflag [#allocation3], %s449_s24 }
  0x1b   : > { %622 = vmatpush.msra.mxu1 %v519_v3  ;;  %v500_v11 = vld [vmem:[%s2514_s1 + $0x58] sm:$0xff]  ;;  %667 = vmatpush.msra.mxu3 %v552_v10  ;;  %v551_v14 = vld [vmem:[%s2514_s1 + $0x1f0] sm:$0xff]  ;;  %v550_v17 = vld [vmem:[%s2514_s1 + $0x1e8] sm:$0xff]  ;;  %s1849_s25 = scalar_lea.vmem %s2540_s0, %s1361_s22  ;;  %p1260_p11 = scmp.lt.s32.totalorder (%p1622_p5), %s1259_s27, 2 }
  0x1c   : > { %600 = vmatpush.msra.mxu0 %v502_v4  ;;  %v516_v12 = vld [vmem:[%s2514_s1 + $0xd8] sm:$0xff]  ;;  %v499_v15 = vld [vmem:[%s2514_s1 + $0x50] sm:$0xff]  ;;  %645 = vmatpush.msra.mxu2 %v535_v9  ;;  %v533_v18 = vld [vmem:[%s2514_s1 + $0x160] sm:$0xff]  ;;  %s2432_s30 = scalar_lea.vmem [#allocation2], %s1360_s23 }
  0x1d   : > { %623 = vmatpush.msra.mxu1 %v518_v5  ;;  %v515_v16 = vld [vmem:[%s2514_s1 + $0xd0] sm:$0xff]  ;;  %668 = vmatpush.msra.mxu3 %v551_v14  ;;  %v549_v19 = vld [vmem:[%s2514_s1 + $0x1e0] sm:$0xff]  ;;  %v498_v20 = vld [vmem:[%s2514_s1 + $0x48] sm:$0xff] }
  0x1e   : > { %601 = vmatpush.msra.mxu0 %v501_v6  ;;  %v514_v21 = vld [vmem:[%s2514_s1 + $0xc8] sm:$0xff]  ;;  %646 = vmatpush.msra.mxu2 %v534_v13  ;;  %v532_v22 = vld [vmem:[%s2514_s1 + $0x158] sm:$0xff]  ;;  %v497_v24 = vld [vmem:[%s2514_s1 + $0x40] sm:$0xff] }
  0x1f   : > { %624 = vmatpush.msra.mxu1 %v517_v7  ;;  %669 = vmatpush.msra.mxu3 %v550_v17  ;;  %v548_v23 = vld [vmem:[%s2514_s1 + $0x1d8] sm:$0xff]  ;;  %v513_v25 = vld [vmem:[%s2514_s1 + $0xc0] sm:$0xff]  ;;  %v531_v26 = vld [vmem:[%s2514_s1 + $0x150] sm:$0xff] }
  0x20   : > { %602 = vmatpush.msra.mxu0 %v500_v11  ;;  %647 = vmatpush.msra.mxu2 %v533_v18  ;;  %v547_v27 = vld [vmem:[%s2514_s1 + $0x1d0] sm:$0xff]  ;;  %v496_v28 = vld [vmem:[%s2514_s1 + $0x38] sm:$0xff]  ;;  %v530_v30 = vld [vmem:[%s2514_s1 + $0x148] sm:$0xff] }
  0x21   : > { %625 = vmatpush.msra.mxu1 %v516_v12  ;;  %670 = vmatpush.msra.mxu3 %v549_v19  ;;  %v512_v29 = vld [vmem:[%s2514_s1 + $0xb8] sm:$0xff]  ;;  %v546_v31 = vld [vmem:[%s2514_s1 + $0x1c8] sm:$0xff]  ;;  %v495_v32 = vld [vmem:[%s2514_s1 + $0x30] sm:$0xff] }
  0x22   : > { %603 = vmatpush.msra.mxu0 %v499_v15  ;;  %648 = vmatpush.msra.mxu2 %v532_v22  ;;  %v511_v33 = vld [vmem:[%s2514_s1 + $0xb0] sm:$0xff]  ;;  %v529_v34 = vld [vmem:[%s2514_s1 + $0x140] sm:$0xff]  ;;  %v494_v36 = vld [vmem:[%s2514_s1 + $0x28] sm:$0xff] }
  0x23   : > { %626 = vmatpush.msra.mxu1 %v515_v16  ;;  %671 = vmatpush.msra.mxu3 %v548_v23  ;;  %v545_v35 = vld [vmem:[%s2514_s1 + $0x1c0] sm:$0xff]  ;;  %v510_v37 = vld [vmem:[%s2514_s1 + $0xa8] sm:$0xff]  ;;  %v528_v38 = vld [vmem:[%s2514_s1 + $0x138] sm:$0xff] }
  0x24   : > { %604 = vmatpush.msra.mxu0 %v498_v20  ;;  %649 = vmatpush.msra.mxu2 %v531_v26  ;;  %v544_v39 = vld [vmem:[%s2514_s1 + $0x1b8] sm:$0xff]  ;;  %v493_v40 = vld [vmem:[%s2514_s1 + $0x20] sm:$0xff]  ;;  %v527_v42 = vld [vmem:[%s2514_s1 + $0x130] sm:$0xff] }
  0x25   : > { %627 = vmatpush.msra.mxu1 %v514_v21  ;;  %672 = vmatpush.msra.mxu3 %v547_v27  ;;  %v509_v41 = vld [vmem:[%s2514_s1 + $0xa0] sm:$0xff]  ;;  %v543_v43 = vld [vmem:[%s2514_s1 + $0x1b0] sm:$0xff]  ;;  %v492_v44 = vld [vmem:[%s2514_s1 + $0x18] sm:$0xff] }
  0x26   : > { %605 = vmatpush.msra.mxu0 %v497_v24  ;;  %650 = vmatpush.msra.mxu2 %v530_v30  ;;  %v508_v45 = vld [vmem:[%s2514_s1 + $0x98] sm:$0xff]  ;;  %v526_v46 = vld [vmem:[%s2514_s1 + $0x128] sm:$0xff]  ;;  %v491_v48 = vld [vmem:[%s2514_s1 + $0x10] sm:$0xff] }
  0x27   : > { %628 = vmatpush.msra.mxu1 %v513_v25  ;;  %673 = vmatpush.msra.mxu3 %v546_v31  ;;  %v542_v47 = vld [vmem:[%s2514_s1 + $0x1a8] sm:$0xff]  ;;  %v507_v49 = vld [vmem:[%s2514_s1 + $0x90] sm:$0xff]  ;;  %v525_v50 = vld [vmem:[%s2514_s1 + $0x120] sm:$0xff] }
  0x28   : > { %606 = vmatpush.msra.mxu0 %v496_v28  ;;  %651 = vmatpush.msra.mxu2 %v529_v34  ;;  %v541_v51 = vld [vmem:[%s2514_s1 + $0x1a0] sm:$0xff]  ;;  %v490_v52 = vld [vmem:[%s2514_s1 + $0x8] sm:$0xff]  ;;  %v524_v54 = vld [vmem:[%s2514_s1 + $0x118] sm:$0xff] }
  0x29   : > { %629 = vmatpush.msra.mxu1 %v512_v29  ;;  %674 = vmatpush.msra.mxu3 %v545_v35  ;;  %v506_v53 = vld [vmem:[%s2514_s1 + $0x88] sm:$0xff]  ;;  %v540_v55 = vld [vmem:[%s2514_s1 + $0x198] sm:$0xff]  ;;  %v489_v56 = vld [vmem:[%s2514_s1] sm:$0xff] }
  0x2a   : > { %607 = vmatpush.msra.mxu0 %v495_v32  ;;  %652 = vmatpush.msra.mxu2 %v528_v38  ;;  %v505_v57 = vld [vmem:[%s2514_s1 + $0x80] sm:$0xff]  ;;  %v568_v58 = vld [vmem:[%s2514_s1 + $0x278] sm:$0xff]  ;;  %v523_v60 = vld [vmem:[%s2514_s1 + $0x110] sm:$0xff] }
  0x2b   : > { %630 = vmatpush.msra.mxu1 %v511_v33  ;;  %675 = vmatpush.msra.mxu3 %v544_v39  ;;  %v584_v59 = vld [vmem:[%s2514_s1 + $0x2f8] sm:$0xff]  ;;  %v539_v61 = vld [vmem:[%s2514_s1 + $0x190] sm:$0xff]  ;;  %v522_v0 = vld [vmem:[%s2514_s1 + $0x108] sm:$0xff] }
  0x2c   : > { %608 = vmatpush.msra.mxu0 %v494_v36  ;;  %653 = vmatpush.msra.mxu2 %v527_v42  ;;  %v567_v62 = vld [vmem:[%s2514_s1 + $0x270] sm:$0xff]  ;;  %v538_v1 = vld [vmem:[%s2514_s1 + $0x188] sm:$0xff]  ;;  %v565_v4 = vld [vmem:[%s2514_s1 + $0x260] sm:$0xff] }
  0x2d   : > { %631 = vmatpush.msra.mxu1 %v510_v37  ;;  %676 = vmatpush.msra.mxu3 %v543_v43  ;;  %v583_v63 = vld [vmem:[%s2514_s1 + $0x2f0] sm:$0xff]  ;;  %v566_v2 = vld [vmem:[%s2514_s1 + $0x268] sm:$0xff]  ;;  %v521_v5 = vld [vmem:[%s2514_s1 + $0x100] sm:$0xff] }
  0x2e   : > { %609 = vmatpush.msra.mxu0 %v493_v40  ;;  %654 = vmatpush.msra.mxu2 %v526_v46  ;;  %v582_v3 = vld [vmem:[%s2514_s1 + $0x2e8] sm:$0xff]  ;;  %v537_v6 = vld [vmem:[%s2514_s1 + $0x180] sm:$0xff]  ;;  %v564_v7 = vld [vmem:[%s2514_s1 + $0x258] sm:$0xff] }
  0x2f   : > { %632 = vmatpush.msra.mxu1 %v509_v41  ;;  %677 = vmatpush.msra.mxu3 %v542_v47  ;;  %v581_v8 = vld [vmem:[%s2514_s1 + $0x2e0] sm:$0xff]  ;;  %v580_v9 = vld [vmem:[%s2514_s1 + $0x2d8] sm:$0xff]  ;;  %v477_v10 = vld [vmem:[%s1849_s25 + $0x10] sm:$0xff] }
  0x30   : > { %610 = vmatpush.msra.mxu0 %v492_v44  ;;  %655 = vmatpush.msra.mxu2 %v525_v50  ;;  %v586_v11 = vld [vmem:[%s2514_s1 + $0x308] sm:$0xff]  ;;  %v475_v12 = vld [vmem:[%s1849_s25] sm:$0xff]  ;;  %v478_v13 = vld [vmem:[%s1849_s25 + $0x18] sm:$0xff] }
  0x31   : > { %633 = vmatpush.msra.mxu1 %v508_v45  ;;  %678 = vmatpush.msra.mxu3 %v541_v51  ;;  %v563_v14 = vld [vmem:[%s2514_s1 + $0x250] sm:$0xff]  ;;  %v476_v16 = vld [vmem:[%s1849_s25 + $0x8] sm:$0xff]  ;;  %v585_v17 = vld [vmem:[%s2514_s1 + $0x300] sm:$0xff] }
  0x32   : > { %611 = vmatpush.msra.mxu0 %v491_v48  ;;  %656 = vmatpush.msra.mxu2 %v524_v54  ;;  %v579_v15 = vld [vmem:[%s2514_s1 + $0x2d0] sm:$0xff]  ;;  %v562_v18 = vld [vmem:[%s2514_s1 + $0x248] sm:$0xff]  ;;  %v776_v20 = vld [vmem:[%s2516_s3 + $0x78] sm:$0xff] }
  0x33   : > { %634 = vmatpush.msra.mxu1 %v507_v49  ;;  %679 = vmatpush.msra.mxu3 %v540_v55  ;;  %v578_v19 = vld [vmem:[%s2514_s1 + $0x2c8] sm:$0xff]  ;;  %v561_v21 = vld [vmem:[%s2514_s1 + $0x240] sm:$0xff]  ;;  %v482_v24 = vld [vmem:[%s1849_s25 + $0x38] sm:$0xff] }
  0x34   : > { %612 = vmatpush.msra.mxu0 %v490_v52  ;;  %657 = vmatpush.msra.mxu2 %v523_v60  ;;  %v577_v22 = vld [vmem:[%s2514_s1 + $0x2c0] sm:$0xff]  ;;  %v484_v23 = vld [vmem:[%s1849_s25 + $0x48] sm:$0xff]  ;;  %v560_v25 = vld [vmem:[%s2514_s1 + $0x238] sm:$0xff] }
  0x35   : > { %635 = vmatpush.msra.mxu1 %v506_v53  ;;  %680 = vmatpush.msra.mxu3 %v539_v61  ;;  %v576_v26 = vld [vmem:[%s2514_s1 + $0x2b8] sm:$0xff]  ;;  %v485_v27 = vld [vmem:[%s1849_s25 + $0x50] sm:$0xff]  ;;  %v483_v30 = vld [vmem:[%s1849_s25 + $0x40] sm:$0xff] }
  0x36   : > { %613 = vmatpush.msra.mxu0 %v489_v56  ;;  %658 = vmatpush.msra.mxu2 %v522_v0  ;;  %v559_v28 = vld [vmem:[%s2514_s1 + $0x230] sm:$0xff]  ;;  %v558_v32 = vld [vmem:[%s2514_s1 + $0x228] sm:$0xff]  ;;  %v557_v35 = vld [vmem:[%s2514_s1 + $0x220] sm:$0xff] }
  0x37   : > { %636 = vmatpush.msra.mxu1 %v505_v57  ;;  %681 = vmatpush.msra.mxu3 %v538_v1  ;;  %v575_v29 = vld [vmem:[%s2514_s1 + $0x2b0] sm:$0xff]  ;;  %v574_v33 = vld [vmem:[%s2514_s1 + $0x2a8] sm:$0xff]  ;;  %v573_v36 = vld [vmem:[%s2514_s1 + $0x2a0] sm:$0xff] }
  0x38   : > { %690 = vmatpush.msrb.mxu0 %v568_v58  ;;  %659 = vmatpush.msra.mxu2 %v521_v5  ;;  %v775_v31 = vld [vmem:[%s2516_s3 + $0x70] sm:$0xff]  ;;  %v774_v34 = vld [vmem:[%s2516_s3 + $0x68] sm:$0xff]  ;;  %v556_v38 = vld [vmem:[%s2514_s1 + $0x218] sm:$0xff] }
  0x39   : > { %713 = vmatpush.msrb.mxu1 %v584_v59  ;;  %682 = vmatpush.msra.mxu3 %v537_v6  ;;  %v481_v37 = vld [vmem:[%s1849_s25 + $0x30] sm:$0xff]  ;;  %v572_v39 = vld [vmem:[%s2514_s1 + $0x298] sm:$0xff]  ;;  %v554_v42 = vld [vmem:[%s2514_s1 + $0x208] sm:$0xff] }
  0x3a   : > { %691 = vmatpush.msrb.mxu0 %v567_v62  ;;  %660 = vmatmul.f32.vlgmr.msra.gmra.mxu2 %v477_v10  ;;  %v555_v40 = vld [vmem:[%s2514_s1 + $0x210] sm:$0xff]  ;;  %v570_v43 = vld [vmem:[%s2514_s1 + $0x288] sm:$0xff]  ;;  %v553_v44 = vld [vmem:[%s2514_s1 + $0x200] sm:$0xff] }
  0x3b   : > { %714 = vmatpush.msrb.mxu1 %v583_v63  ;;  %614 = vmatmul.f32.vlgmr.msra.gmra.mxu0 %v475_v12  ;;  %v571_v41 = vld [vmem:[%s2514_s1 + $0x290] sm:$0xff]  ;;  %v569_v45 = vld [vmem:[%s2514_s1 + $0x280] sm:$0xff]  ;;  %v480_v47 = vld [vmem:[%s1849_s25 + $0x28] sm:$0xff] }
  0x3c   : > { %692 = vmatpush.msrb.mxu0 %v566_v2  ;;  %750 = vmatpush.msrb.mxu2 %v586_v11  ;;  %v479_v46 = vld [vmem:[%s1849_s25 + $0x20] sm:$0xff]  ;;  %v488_v48 = vld [vmem:[%s1849_s25 + $0x68] sm:$0xff]  ;;  %v486_v49 = vld [vmem:[%s1849_s25 + $0x58] sm:$0xff] }
  0x3d   : > { %715 = vmatpush.msrb.mxu1 %v582_v3  ;;  %683 = vmatmul.f32.vlgmr.msra.gmra.mxu3 %v478_v13  ;;  %v487_v50 = vld [vmem:[%s1849_s25 + $0x60] sm:$0xff]  ;;  %v772_v52 = vld [vmem:[%s2516_s3 + $0x58] sm:$0xff]  ;;  %v771_v53 = vld [vmem:[%s2516_s3 + $0x50] sm:$0xff] }
  0x3e   : > { %693 = vmatpush.msrb.mxu0 %v565_v4  ;;  %637 = vmatmul.f32.vlgmr.msra.gmra.mxu1 %v476_v16  ;;  %v773_v51 = vld [vmem:[%s2516_s3 + $0x60] sm:$0xff]  ;;  %v770_v54 = vld [vmem:[%s2516_s3 + $0x48] sm:$0xff]  ;;  %v768_v56 = vld [vmem:[%s2516_s3 + $0x38] sm:$0xff] }
  0x3f   : > { %716 = vmatpush.msrb.mxu1 %v581_v8  ;;  %751 = vmatpush.msrb.mxu2 %v585_v17  ;;  %v769_v55 = vld [vmem:[%s2516_s3 + $0x40] sm:$0xff]  ;;  %v767_v57 = vld [vmem:[%s2516_s3 + $0x30] sm:$0xff]  ;;  %v766_v58 = vld [vmem:[%s2516_s3 + $0x28] sm:$0xff] }
  0x40   : > { %694 = vmatpush.msrb.mxu0 %v564_v7  ;;  %781 = vmatpush.msrb.mxu3 %v776_v20  ;;  %v765_v59 = vld [vmem:[%s2516_s3 + $0x20] sm:$0xff]  ;;  %v764_v60 = vld [vmem:[%s2516_s3 + $0x18] sm:$0xff]  ;;  %v763_v61 = vld [vmem:[%s2516_s3 + $0x10] sm:$0xff] }
  0x41   : > { %717 = vmatpush.msrb.mxu1 %v580_v9  ;;  %v762_v62 = vld [vmem:[%s2516_s3 + $0x8] sm:$0xff]  ;;  %v761_v63 = vld [vmem:[%s2516_s3] sm:$0xff]  ;;  %v813_v4 = vld [vmem:[%s2518_s5 + $0x38] sm:$0xff] }
  0x42   : > { %695 = vmatpush.msrb.mxu0 %v563_v14  ;;  %663 = vmatmul.f32.gmra.mxu2 %v484_v23  ;;  %v1403_v3 = vld [vmem:[%s2515_s2] ss:$0 sm:$0xff]  ;;  %v812_v5 = vld [vmem:[%s2518_s5 + $0x30] sm:$0xff]  ;;  %v811_v7 = vld [vmem:[%s2518_s5 + $0x28] sm:$0xff] }
  0x43   : > { %718 = vmatpush.msrb.mxu1 %v579_v15  ;;  %617 = vmatmul.f32.gmra.mxu0 %v482_v24  ;;  %v810_v9 = vld [vmem:[%s2518_s5 + $0x20] sm:$0xff]  ;;  %v809_v13 = vld [vmem:[%s2518_s5 + $0x18] sm:$0xff]  ;;  %v808_v14 = vld [vmem:[%s2518_s5 + $0x10] sm:$0xff] }
  0x44   : > { %696 = vmatpush.msrb.mxu0 %v562_v18  ;;  %782 = vmatpush.msrb.mxu3 %v775_v31 }
  0x45   : > { %719 = vmatpush.msrb.mxu1 %v578_v19  ;;  %686 = vmatmul.f32.gmra.mxu3 %v485_v27 }
  0x46   : > { %697 = vmatpush.msrb.mxu0 %v561_v21  ;;  %640 = vmatmul.f32.gmra.mxu1 %v483_v30 }
  0x47   : > { %720 = vmatpush.msrb.mxu1 %v577_v22  ;;  %783 = vmatpush.msrb.mxu3 %v774_v34 }
  0x48   : > { %698 = vmatpush.msrb.mxu0 %v560_v25  ;;  %833 = vmatpush.msra.mxu2 %v813_v4  ;;  %v1031_v4 = vld [vmem:[%s2524_s11 + $0x310] sm:$0xff] }
  0x49   : > { %721 = vmatpush.msrb.mxu1 %v576_v26  ;;  %784 = vmatpush.msrb.mxu3 %v773_v51  ;;  %v896_v51 = vld [vmem:[%s2522_s9 + $0x30] sm:$0xff] }
  0x4a   : > { %699 = vmatpush.msrb.mxu0 %v559_v28  ;;  %1343 = vmatmul.msk.f32.vlgmr.msrb.gmra.mxu2 %vm591_vm0, %v481_v37  ;;  %v807_v37 = vld [vmem:[%s2518_s5 + $0x8] sm:$0xff] }
  0x4b   : > { %722 = vmatpush.msrb.mxu1 %v575_v29  ;;  %785 = vmatpush.msrb.mxu3 %v772_v52  ;;  %v895_v52 = vld [vmem:[%s2522_s9 + $0x28] sm:$0xff] }
  0x4c   : > { %700 = vmatpush.msrb.mxu0 %v558_v32  ;;  %834 = vmatpush.msra.mxu2 %v812_v5  ;;  %v1032_v5 = vld [vmem:[%s2524_s11 + $0x318] sm:$0xff] }
  0x4d   : > { %723 = vmatpush.msrb.mxu1 %v574_v33  ;;  %786 = vmatpush.msrb.mxu3 %v771_v53  ;;  %v894_v53 = vld [vmem:[%s2522_s9 + $0x20] sm:$0xff] }
  0x4e   : > { %701 = vmatpush.msrb.mxu0 %v557_v35  ;;  %835 = vmatpush.msra.mxu2 %v811_v7  ;;  %v1024_v7 = vld [vmem:[%s2524_s11 + $0x2d8] sm:$0xff] }
  0x4f   : > { %724 = vmatpush.msrb.mxu1 %v573_v36  ;;  %787 = vmatpush.msrb.mxu3 %v770_v54  ;;  %v893_v54 = vld [vmem:[%s2522_s9 + $0x18] sm:$0xff] }
  0x50   : > { %702 = vmatpush.msrb.mxu0 %v556_v38  ;;  %836 = vmatpush.msra.mxu2 %v810_v9  ;;  %v806_v38 = vld [vmem:[%s2518_s5] sm:$0xff]  ;;  %v1026_v9 = vld [vmem:[%s2524_s11 + $0x2e8] sm:$0xff] }
  0x51   : > { %725 = vmatpush.msrb.mxu1 %v572_v39  ;;  %788 = vmatpush.msrb.mxu3 %v769_v55  ;;  %v853_v39 = vld [vmem:[%s2520_s7 + $0x18] sm:$0xff]  ;;  %v892_v55 = vld [vmem:[%s2522_s9 + $0x10] sm:$0xff] }
  0x52   : > { %703 = vmatpush.msrb.mxu0 %v555_v40  ;;  %1344 = vmatmul.msk.f32.gmra.mxu2 %vm591_vm0, %v488_v48  ;;  %v852_v40 = vld [vmem:[%s2520_s7 + $0x10] sm:$0xff] }
  0x53   : > { %726 = vmatpush.msrb.mxu1 %v571_v41  ;;  %789 = vmatpush.msrb.mxu3 %v768_v56  ;;  %v851_v41 = vld [vmem:[%s2520_s7 + $0x8] sm:$0xff]  ;;  %v1405_v56 = vld [vmem:[%s2519_s6] ss:$0 sm:$0xff] }
  0x54   : > { %704 = vmatpush.msrb.mxu0 %v554_v42  ;;  %837 = vmatpush.msra.mxu2 %v809_v13  ;;  %v1404_v42 = vld [vmem:[%s2517_s4] ss:$0 sm:$0xff]  ;;  %v1010_v13 = vld [vmem:[%s2524_s11 + $0x268] sm:$0xff] }
  0x55   : > { %727 = vmatpush.msrb.mxu1 %v570_v43  ;;  %790 = vmatpush.msrb.mxu3 %v767_v57 }
  0x56   : > { %705 = vmatpush.msrb.mxu0 %v553_v44  ;;  %838 = vmatpush.msra.mxu2 %v808_v14  ;;  %v1011_v14 = vld [vmem:[%s2524_s11 + $0x270] sm:$0xff] }
  0x57   : > { %728 = vmatpush.msrb.mxu1 %v569_v45  ;;  %706 = vmatmul.f32.vlgmr.msrb.gmra.mxu0 %v479_v46 }
  0x58   : > { %729 = vmatmul.f32.vlgmr.msrb.gmra.mxu1 %v480_v47  ;;  %791 = vmatpush.msrb.mxu3 %v766_v58 }
  0x59   : > { %839 = vmatpush.msra.mxu2 %v807_v37  ;;  %877 = vmatpush.msra.mxu1 %v853_v39  ;;  %v1006_v37 = vld [vmem:[%s2524_s11 + $0x248] sm:$0xff]  ;;  %v969_v39 = vld [vmem:[%s2524_s11 + $0x120] sm:$0xff] }
  0x5a   : > { %792 = vmatpush.msrb.mxu3 %v765_v59 }
  0x5b   : > { %840 = vmatpush.msra.mxu2 %v806_v38  ;;  %878 = vmatpush.msra.mxu1 %v852_v40  ;;  %v968_v38 = vld [vmem:[%s2524_s11 + $0x118] sm:$0xff] }
  0x5c   : > { %793 = vmatpush.msrb.mxu3 %v764_v60 }
  0x5d   : > { %879 = vmatpush.msra.mxu1 %v851_v41  ;;  %v970_v41 = vld [vmem:[%s2524_s11 + $0x128] sm:$0xff] }
  0x5e   : > { %794 = vmatpush.msrb.mxu3 %v763_v61 }
  0x5f   : > { %709 = vmatmul.f32.gmra.mxu0 %v486_v49  ;;  %v850_v49 = vld [vmem:[%s2520_s7] sm:$0xff] }
  0x60   : > { %732 = vmatmul.f32.gmra.mxu1 %v487_v50  ;;  %795 = vmatpush.msrb.mxu3 %v762_v62  ;;  %v897_v50 = vld [vmem:[%s2522_s9 + $0x38] sm:$0xff] }
  0x61   : > { %880 = vmatpush.msra.mxu1 %v850_v49  ;;  %v955_v49 = vld [vmem:[%s2524_s11 + $0xb0] sm:$0xff] }
  0x62   : > { %796 = vmatpush.msrb.mxu3 %v761_v63  ;;  %v891_v63 = vld [vmem:[%s2522_s9 + $0x8] sm:$0xff] }
  0x63   : > { %916 = vmatpush.msrb.mxu1 %v897_v50  ;;  %v956_v50 = vld [vmem:[%s2524_s11 + $0xb8] sm:$0xff] }
  0x65   : > { %917 = vmatpush.msrb.mxu1 %v896_v51  ;;  %v992_v51 = vld [vmem:[%s2524_s11 + $0x1d8] sm:$0xff] }
  0x67   : > { %918 = vmatpush.msrb.mxu1 %v895_v52  ;;  %v947_v52 = vld [vmem:[%s2524_s11 + $0x70] sm:$0xff] }
  0x69   : > { %919 = vmatpush.msrb.mxu1 %v894_v53  ;;  %v948_v53 = vld [vmem:[%s2524_s11 + $0x78] sm:$0xff] }
  0x6b   : > { %920 = vmatpush.msrb.mxu1 %v893_v54  ;;  %v949_v54 = vld [vmem:[%s2524_s11 + $0x80] sm:$0xff] }
  0x6d   : > { %921 = vmatpush.msrb.mxu1 %v892_v55  ;;  %v985_v55 = vld [vmem:[%s2524_s11 + $0x1a0] sm:$0xff] }
  0x6f   : > { %922 = vmatpush.msrb.mxu1 %v891_v63  ;;  %v934_v63 = vld [vmem:[%s2524_s11 + $0x8] sm:$0xff] }
  0xb8   : > { %v615_v0 = vpop.f32.mrf.mxu0 }
  0xb9   : > { %v616_v6 = vadd.f32 %v1403_v3, %v615_v0  ;;  %v890_v0 = vld [vmem:[%s2522_s9] sm:$0xff] }
  0xba   : > { %923 = vmatpush.msrb.mxu1 %v890_v0  ;;  %v935_v0 = vld [vmem:[%s2524_s11 + $0x10] sm:$0xff] }
  0xbb   : > { %v638_v1 = vpop.f32.mrf.mxu1 }
  0xbc   : > { %v639_v12 = vadd.f32 %v638_v1, %v616_v6  ;;  %v1038_v1 = vld [vmem:[%s2524_s11 + $0x348] sm:$0xff]  ;;  %v1033_v6 = vld [vmem:[%s2524_s11 + $0x320] sm:$0xff] }
  0xbd   : > { %v661_v2 = vpop.f32.mrf.mxu2  ;;  %1061 = vmatpush.msrb.mxu2 %v1038_v1 }
  0xbe   : > { %v662_v16 = vadd.f32 %v661_v2, %v639_v12  ;;  %v1039_v2 = vld [vmem:[%s2524_s11 + $0x350] sm:$0xff] }
  0xbf   : > { %1084 = vmatpush.msra.mxu3 %v1039_v2  ;;  %1062 = vmatpush.msrb.mxu2 %v1031_v4  ;;  %v1019_v12 = vld [vmem:[%s2524_s11 + $0x2b0] sm:$0xff]  ;;  %v1042_v2 = vld [vmem:[%s2524_s11 + $0x368] sm:$0xff]  ;;  %v1044_v4 = vld [vmem:[%s2524_s11 + $0x378] sm:$0xff] }
  0xc0   : > { %v618_v8 = vpop.f32.mrf.mxu0  ;;  %v684_v15 = vpop.f32.mrf.mxu3 }
  0xc1   : > { %v619_v17 = vadd.f32 %v1403_v3, %v618_v8  ;;  %v685_v18 = vadd.f32 %v684_v15, %v662_v16  ;;  %v1040_v3 = vld [vmem:[%s2524_s11 + $0x358] sm:$0xff]  ;;  %v1025_v8 = vld [vmem:[%s2524_s11 + $0x2e0] sm:$0xff]  ;;  %1085 = vmatpush.msra.mxu3 %v1032_v5  ;;  %1063 = vmatpush.msrb.mxu2 %v1024_v7  ;;  %v1003_v16 = vld [vmem:[%s2524_s11 + $0x230] sm:$0xff] }
  0xc2   : > { %1107 = vmatpush.msra.mxu0 %v1040_v3  ;;  %v1012_v15 = vld [vmem:[%s2524_s11 + $0x278] sm:$0xff]  ;;  %v1043_v3 = vld [vmem:[%s2524_s11 + $0x370] sm:$0xff] }
  0xc3   : > { %v641_v10 = vpop.f32.mrf.mxu1  ;;  %1086 = vmatpush.msra.mxu3 %v1025_v8  ;;  %v971_v5 = vld [vmem:[%s2524_s11 + $0x130] sm:$0xff]  ;;  %v1036_v7 = vld [vmem:[%s2524_s11 + $0x338] sm:$0xff]  ;;  %v1037_v8 = vld [vmem:[%s2524_s11 + $0x340] sm:$0xff] }
  0xc4   : > { %v642_v19 = vadd.f32 %v641_v10, %v619_v17  ;;  %1108 = vmatpush.msra.mxu0 %v1033_v6  ;;  %v1017_v10 = vld [vmem:[%s2524_s11 + $0x2a0] sm:$0xff]  ;;  %v1004_v17 = vld [vmem:[%s2524_s11 + $0x238] sm:$0xff]  ;;  %v1035_v6 = vld [vmem:[%s2524_s11 + $0x330] sm:$0xff] }
  0xc5   : > { %v664_v11 = vpop.f32.mrf.mxu2  ;;  %1064 = vmatpush.msrb.mxu2 %v1017_v10  ;;  %v1028_v10 = vld [vmem:[%s2524_s11 + $0x2f8] sm:$0xff] }
  0xc6   : > { %v665_v24 = vadd.f32 %v664_v11, %v642_v19  ;;  %v1018_v11 = vld [vmem:[%s2524_s11 + $0x2a8] sm:$0xff]  ;;  %1109 = vmatpush.msra.mxu0 %v1026_v9  ;;  %v1005_v19 = vld [vmem:[%s2524_s11 + $0x240] sm:$0xff]  ;;  %v964_v9 = vld [vmem:[%s2524_s11 + $0xf8] sm:$0xff] }
  0xc7   : > { %1087 = vmatpush.msra.mxu3 %v1018_v11  ;;  %1065 = vmatpush.msrb.mxu2 %v1010_v13  ;;  %v1029_v11 = vld [vmem:[%s2524_s11 + $0x300] sm:$0xff] }
  0xc8   : > { %v687_v26 = vpop.f32.mrf.mxu3  ;;  %1110 = vmatpush.msra.mxu0 %v1019_v12  ;;  %v1030_v12 = vld [vmem:[%s2524_s11 + $0x308] sm:$0xff]  ;;  %v957_v13 = vld [vmem:[%s2524_s11 + $0xc0] sm:$0xff] }
  0xc9   : > { %v688_v28 = vadd.f32 %v687_v26, %v665_v24  ;;  %1088 = vmatpush.msra.mxu3 %v1011_v14  ;;  %1066 = vmatpush.msrb.mxu2 %v1003_v16  ;;  %v1027_v24 = vld [vmem:[%s2524_s11 + $0x2f0] sm:$0xff]  ;;  %v990_v26 = vld [vmem:[%s2524_s11 + $0x1c8] sm:$0xff]  ;;  %v1021_v14 = vld [vmem:[%s2524_s11 + $0x2c0] sm:$0xff] }
  0xca   : > { %1111 = vmatpush.msra.mxu0 %v1012_v15  ;;  %v1022_v15 = vld [vmem:[%s2524_s11 + $0x2c8] sm:$0xff]  ;;  %v1023_v16 = vld [vmem:[%s2524_s11 + $0x2d0] sm:$0xff] }
  0xcb   : > { %1089 = vmatpush.msra.mxu3 %v1004_v17  ;;  %v1014_v17 = vld [vmem:[%s2524_s11 + $0x288] sm:$0xff] }
  0xcc   : > { %1112 = vmatpush.msra.mxu0 %v1005_v19  ;;  %v1016_v19 = vld [vmem:[%s2524_s11 + $0x298] sm:$0xff] }
  0xcd   : > { %v753_v20 = vpop.f32.mrf.mxu2 }
  0xd4   : > { %v707_v21 = vpop.f32.mrf.mxu0 }
  0xd5   : > { %v730_v22 = vpop.f32.mrf.mxu1  ;;  %v708_v23 = vadd.f32 %v707_v21, %v685_v18  ;;  %v756_v33 = vpop.f32.mrf.mxu2  ;;  %v1041_v18 = vld [vmem:[%s2524_s11 + $0x360] sm:$0xff]  ;;  %v996_v21 = vld [vmem:[%s2524_s11 + $0x1f8] sm:$0xff] }
  0xd6   : > { %1067 = vmatpush.msrb.mxu2 %v996_v21  ;;  %v1007_v21 = vld [vmem:[%s2524_s11 + $0x250] sm:$0xff] }
  0xd7   : > { %v731_v25 = vadd.f32 %v730_v22, %v708_v23  ;;  %v997_v22 = vld [vmem:[%s2524_s11 + $0x200] sm:$0xff]  ;;  %v998_v23 = vld [vmem:[%s2524_s11 + $0x208] sm:$0xff] }
  0xd8   : > { %1090 = vmatpush.msra.mxu3 %v997_v22  ;;  %1113 = vmatpush.msra.mxu0 %v998_v23  ;;  %v1008_v22 = vld [vmem:[%s2524_s11 + $0x258] sm:$0xff]  ;;  %v1009_v23 = vld [vmem:[%s2524_s11 + $0x260] sm:$0xff] }
  0xd9   : > { %v754_v27 = vadd.f32 %v753_v20, %v731_v25  ;;  %v1034_v20 = vld [vmem:[%s2524_s11 + $0x328] sm:$0xff]  ;;  %v989_v25 = vld [vmem:[%s2524_s11 + $0x1c0] sm:$0xff] }
  0xda   : > { %1068 = vmatpush.msrb.mxu2 %v989_v25  ;;  %1091 = vmatpush.msra.mxu3 %v990_v26  ;;  %v1000_v25 = vld [vmem:[%s2524_s11 + $0x218] sm:$0xff]  ;;  %v1001_v26 = vld [vmem:[%s2524_s11 + $0x220] sm:$0xff] }
  0xdb   : > { %v759_v29 = vmax.f32 %v754_v27, 0.0  ;;  %v991_v27 = vld [vmem:[%s2524_s11 + $0x1d0] sm:$0xff] }
  0xdc   : > { %v710_v30 = vpop.f32.mrf.mxu0  ;;  %1114 = vmatpush.msra.mxu0 %v991_v27  ;;  %v1002_v27 = vld [vmem:[%s2524_s11 + $0x228] sm:$0xff] }
  0xdd   : > { %v733_v31 = vpop.f32.mrf.mxu1  ;;  %v711_v32 = vadd.f32 %v710_v30, %v688_v28  ;;  %797 = vmatmul.f32.vlgmr.msrb.gmra.mxu3 %v759_v29  ;;  %v1020_v28 = vld [vmem:[%s2524_s11 + $0x2b8] sm:$0xff]  ;;  %v982_v29 = vld [vmem:[%s2524_s11 + $0x188] sm:$0xff]  ;;  %v983_v30 = vld [vmem:[%s2524_s11 + $0x190] sm:$0xff] }
  0xde   : > { %1069 = vmatpush.msrb.mxu2 %v982_v29  ;;  %1092 = vmatpush.msra.mxu3 %v983_v30  ;;  %v993_v29 = vld [vmem:[%s2524_s11 + $0x1e0] sm:$0xff]  ;;  %v994_v30 = vld [vmem:[%s2524_s11 + $0x1e8] sm:$0xff] }
  0xdf   : > { %v734_v34 = vadd.f32 %v733_v31, %v711_v32  ;;  %v984_v31 = vld [vmem:[%s2524_s11 + $0x198] sm:$0xff]  ;;  %v1013_v32 = vld [vmem:[%s2524_s11 + $0x280] sm:$0xff] }
  0xe0   : > { %1115 = vmatpush.msra.mxu0 %v984_v31  ;;  %v995_v31 = vld [vmem:[%s2524_s11 + $0x1f0] sm:$0xff] }
  0xe1   : > { %v757_v35 = vadd.f32 %v756_v33, %v734_v34  ;;  %v1406_v33 = vld [vmem:[%s2521_s8] ss:$0 sm:$0xff]  ;;  %v975_v34 = vld [vmem:[%s2524_s11 + $0x150] sm:$0xff] }
  0xe2   : > { %1070 = vmatpush.msrb.mxu2 %v975_v34  ;;  %v988_v34 = vld [vmem:[%s2524_s11 + $0x1b8] sm:$0xff] }
  0xe3   : > { %v760_v36 = vmax.f32 %v757_v35, 0.0  ;;  %v976_v35 = vld [vmem:[%s2524_s11 + $0x158] sm:$0xff] }
  0xe4   : > { %1093 = vmatpush.msra.mxu3 %v976_v35  ;;  %1071 = vmatpush.msrb.mxu2 %v968_v38  ;;  %v979_v35 = vld [vmem:[%s2524_s11 + $0x170] sm:$0xff]  ;;  %v972_v38 = vld [vmem:[%s2524_s11 + $0x138] sm:$0xff] }
  0xe5   : > { %800 = vmatmul.f32.gmra.mxu3 %v760_v36  ;;  %v977_v36 = vld [vmem:[%s2524_s11 + $0x160] sm:$0xff] }
  0xe6   : > { %1116 = vmatpush.msra.mxu0 %v977_v36  ;;  %1094 = vmatpush.msra.mxu3 %v969_v39  ;;  %v980_v36 = vld [vmem:[%s2524_s11 + $0x178] sm:$0xff]  ;;  %v973_v39 = vld [vmem:[%s2524_s11 + $0x140] sm:$0xff] }
  0xe8   : > { %1117 = vmatpush.msra.mxu0 %v970_v41  ;;  %v965_v41 = vld [vmem:[%s2524_s11 + $0x100] sm:$0xff] }
 0x160   : > { %v798_v43 = vpop.f32.mrf.mxu3 }
 0x161   : > { %v799_v44 = vadd.f32 %v1404_v42, %v798_v43 }
 0x163   : > { %v804_v45 = vmax.f32 %v799_v44, 0.0  ;;  %v961_v44 = vld [vmem:[%s2524_s11 + $0xe0] sm:$0xff] }
 0x164   : > { %1072 = vmatpush.msrb.mxu2 %v961_v44  ;;  %v958_v44 = vld [vmem:[%s2524_s11 + $0xc8] sm:$0xff] }
 0x165   : > { %1345 = vmatmul.msk.f32.vlgmr.msra.gmra.mxu2 %vm818_vm1, %v804_v45  ;;  %v962_v45 = vld [vmem:[%s2524_s11 + $0xe8] sm:$0xff] }
 0x166   : > { %1095 = vmatpush.msra.mxu3 %v962_v45  ;;  %v959_v45 = vld [vmem:[%s2524_s11 + $0xd0] sm:$0xff] }
 0x168   : > { %v801_v46 = vpop.f32.mrf.mxu3  ;;  %1096 = vmatpush.msra.mxu3 %v955_v49  ;;  %v953_v49 = vld [vmem:[%s2524_s11 + $0xa0] sm:$0xff] }
 0x169   : > { %v802_v47 = vadd.f32 %v1404_v42, %v801_v46  ;;  %v999_v42 = vld [vmem:[%s2524_s11 + $0x210] sm:$0xff] }
 0x16a   : > { %v963_v46 = vld [vmem:[%s2524_s11 + $0xf0] sm:$0xff]  ;;  %1097 = vmatpush.msra.mxu3 %v948_v53  ;;  %v937_v53 = vld [vmem:[%s2524_s11 + $0x20] sm:$0xff] }
 0x16b   : > { %v805_v48 = vmax.f32 %v802_v47, 0.0  ;;  %1118 = vmatpush.msra.mxu0 %v963_v46  ;;  %v960_v46 = vld [vmem:[%s2524_s11 + $0xd8] sm:$0xff] }
 0x16d   : > { %1346 = vmatmul.msk.f32.gmra.mxu2 %vm818_vm1, %v805_v48  ;;  %v954_v48 = vld [vmem:[%s2524_s11 + $0xa8] sm:$0xff]  ;;  %1119 = vmatpush.msra.mxu0 %v956_v50  ;;  %v944_v50 = vld [vmem:[%s2524_s11 + $0x58] sm:$0xff] }
 0x16e   : > { %1073 = vmatpush.msrb.mxu2 %v954_v48  ;;  %v952_v48 = vld [vmem:[%s2524_s11 + $0x98] sm:$0xff] }
 0x16f   : > { %1120 = vmatpush.msra.mxu0 %v949_v54  ;;  %v938_v54 = vld [vmem:[%s2524_s11 + $0x28] sm:$0xff] }
 0x170   : > { %1074 = vmatpush.msrb.mxu2 %v947_v52  ;;  %v946_v52 = vld [vmem:[%s2524_s11 + $0x68] sm:$0xff] }
 0x1e8   : > { %v842_v57 = vpop.f32.mrf.mxu2 }
 0x1e9   : > { %v843_v58 = vadd.f32 %v1405_v56, %v842_v57  ;;  %v941_v57 = vld [vmem:[%s2524_s11 + $0x40] sm:$0xff] }
 0x1ea   : > { %1098 = vmatpush.msra.mxu3 %v941_v57 }
 0x1eb   : > { %v848_v59 = vmax.f32 %v843_v58, 0.0 }
 0x1ec   : > { %1099 = vmatpush.msra.mxu3 %v934_v63  ;;  %v2424_v63 = vld [vmem:[%s2525_s12] sm:$0x7f] }
 0x1ed   : > { %1347 = vmatmul.msk.f32.vlgmr.msra.gmra.mxu1 %vm858_vm2, %v848_v59  ;;  %v942_v59 = vld [vmem:[%s2524_s11 + $0x48] sm:$0xff] }
 0x1ee   : > { %1130 = vmatpush.msra.mxu1 %v1041_v18  ;;  %1121 = vmatpush.msra.mxu0 %v942_v59  ;;  %v1015_v18 = vld [vmem:[%s2524_s11 + $0x290] sm:$0xff] }
 0x1ef   : > { %1176 = vmatpush.msrb.mxu3 %v1043_v3 }
 0x1f0   : > { %v845_v60 = vpop.f32.mrf.mxu2  ;;  %1131 = vmatpush.msra.mxu1 %v1034_v20  ;;  %1122 = vmatpush.msra.mxu0 %v935_v0  ;;  %v950_v20 = vld [vmem:[%s2524_s11 + $0x88] sm:$0xff]  ;;  %v1049_v0 = vperm.slane %v2424_v63, 2 }
 0x1f1   : > { %v846_v61 = vadd.f32 %v1405_v56, %v845_v60  ;;  %v940_v56 = vld [vmem:[%s2524_s11 + $0x38] sm:$0xff]  ;;  %v978_v60 = vld [vmem:[%s2524_s11 + $0x168] sm:$0xff]  ;;  %1177 = vmatpush.msrb.mxu3 %v1036_v7  ;;  %v1048_v7 = vperm.slane %v2424_v63, 1 }
 0x1f2   : > { %1132 = vmatpush.msra.mxu1 %v1027_v24  ;;  %1075 = vmatpush.msrb.mxu2 %v940_v56  ;;  %v943_v24 = vld [vmem:[%s2524_s11 + $0x50] sm:$0xff]  ;;  %v1407_v56 = vld [vmem:[%s2523_s10] ss:$0 sm:$0xff] }
 0x1f3   : > { %v849_v62 = vmax.f32 %v846_v61, 0.0  ;;  %1199 = vmatpush.msrb.mxu0 %v1044_v4  ;;  %1178 = vmatpush.msrb.mxu3 %v1029_v11 }
 0x1f4   : > { %1133 = vmatpush.msra.mxu1 %v1020_v28  ;;  %v936_v28 = vld [vmem:[%s2524_s11 + $0x18] sm:$0xff] }
 0x1f5   : > { %1348 = vmatmul.msk.f32.gmra.mxu1 %vm858_vm2, %v849_v62  ;;  %v933_v62 = vld [vmem:[%s2524_s11] sm:$0xff]  ;;  %1200 = vmatpush.msrb.mxu0 %v1037_v8 }
 0x1f6   : > { %1134 = vmatpush.msra.mxu1 %v1013_v32  ;;  %1076 = vmatpush.msrb.mxu2 %v933_v62  ;;  %v986_v32 = vld [vmem:[%s2524_s11 + $0x1a8] sm:$0xff] }
 0x1f7   : > { %1201 = vmatpush.msrb.mxu0 %v1030_v12  ;;  %1179 = vmatpush.msrb.mxu3 %v1022_v15 }
 0x1f8   : > { %1135 = vmatpush.msra.mxu1 %v1006_v37  ;;  %1153 = vmatpush.msra.mxu2 %v1042_v2  ;;  %v981_v37 = vld [vmem:[%s2524_s11 + $0x180] sm:$0xff] }
 0x1f9   : > { %1202 = vmatpush.msrb.mxu0 %v1023_v16  ;;  %1180 = vmatpush.msrb.mxu3 %v1015_v18 }
 0x1fa   : > { %1136 = vmatpush.msra.mxu1 %v999_v42  ;;  %1154 = vmatpush.msra.mxu2 %v1035_v6  ;;  %v966_v42 = vld [vmem:[%s2524_s11 + $0x108] sm:$0xff]  ;;  %v1047_v6 = vperm.slane %v2424_v63, 0 }
 0x1fb   : > { %1203 = vmatpush.msrb.mxu0 %v1016_v19  ;;  %1181 = vmatpush.msrb.mxu3 %v1008_v22 }
 0x1fc   : > { %1137 = vmatpush.msra.mxu1 %v992_v51  ;;  %1155 = vmatpush.msra.mxu2 %v1028_v10  ;;  %v945_v51 = vld [vmem:[%s2524_s11 + $0x60] sm:$0xff] }
 0x1fd   : > { %1204 = vmatpush.msrb.mxu0 %v1009_v23  ;;  %1182 = vmatpush.msrb.mxu3 %v1001_v26 }
 0x1fe   : > { %1138 = vmatpush.msra.mxu1 %v985_v55  ;;  %1156 = vmatpush.msra.mxu2 %v1021_v14  ;;  %v939_v55 = vld [vmem:[%s2524_s11 + $0x30] sm:$0xff] }
 0x1ff   : > { %1205 = vmatpush.msrb.mxu0 %v1002_v27  ;;  %1183 = vmatpush.msrb.mxu3 %v994_v30  ;;  %v1052_v30 = vperm.slane %v2424_v63, 5 }
 0x200   : > { %1139 = vmatpush.msra.mxu1 %v978_v60  ;;  %1157 = vmatpush.msra.mxu2 %v1014_v17 }
 0x201   : > { %1206 = vmatpush.msrb.mxu0 %v995_v31 }
 0x202   : > { %1140 = vmatpush.msra.mxu1 %v971_v5  ;;  %1158 = vmatpush.msra.mxu2 %v1007_v21 }
 0x203   : > { %1207 = vmatpush.msrb.mxu0 %v988_v34 }
 0x204   : > { %1141 = vmatpush.msra.mxu1 %v964_v9  ;;  %1159 = vmatpush.msra.mxu2 %v1000_v25 }
 0x205   : > { %1208 = vmatpush.msrb.mxu0 %v981_v37 }
 0x206   : > { %1142 = vmatpush.msra.mxu1 %v957_v13  ;;  %1160 = vmatpush.msra.mxu2 %v993_v29  ;;  %v1051_v29 = vperm.slane %v2424_v63, 4 }
 0x208   : > { %1143 = vmatpush.msra.mxu1 %v950_v20  ;;  %1161 = vmatpush.msra.mxu2 %v986_v32  ;;  %v1053_v20 = vperm.slane %v2424_v63, 6 }
 0x20a   : > { %1144 = vmatpush.msra.mxu1 %v943_v24  ;;  %1162 = vmatpush.msra.mxu2 %v979_v35 }
 0x20c   : > { %1145 = vmatpush.msra.mxu1 %v936_v28  ;;  %1163 = vmatpush.msra.mxu2 %v972_v38 }
 0x20e   : > { %1164 = vmatpush.msra.mxu2 %v965_v41 }
 0x210   : > { %1165 = vmatpush.msra.mxu2 %v958_v44 }
 0x26a   : > { %v882_v40 = vpop.f32.mrf.mxu1 }
 0x26b   : > { %v883_v43 = vadd.f32 %v1406_v33, %v882_v40  ;;  %v974_v40 = vld [vmem:[%s2524_s11 + $0x148] sm:$0xff] }
 0x26c   : > { %1209 = vmatpush.msrb.mxu0 %v974_v40 }
 0x26d   : > { %v888_v47 = vmax.f32 %v883_v43, 0.0  ;;  %v967_v43 = vld [vmem:[%s2524_s11 + $0x110] sm:$0xff] }
 0x26e   : > { %1210 = vmatpush.msrb.mxu0 %v967_v43 }
 0x26f   : > { %1349 = vmatmul.msk.f32.vlgmr.msrb.gmra.mxu1 %vm818_vm1, %v888_v47  ;;  %v951_v47 = vld [vmem:[%s2524_s11 + $0x90] sm:$0xff] }
 0x270   : > { %1211 = vmatpush.msrb.mxu0 %v960_v46  ;;  %1166 = vmatpush.msra.mxu2 %v951_v47 }
 0x272   : > { %v885_v58 = vpop.f32.mrf.mxu1  ;;  %1212 = vmatpush.msrb.mxu0 %v953_v49  ;;  %1167 = vmatpush.msra.mxu2 %v944_v50 }
 0x273   : > { %v886_v61 = vadd.f32 %v1406_v33, %v885_v58  ;;  %v987_v33 = vld [vmem:[%s2524_s11 + $0x1b0] sm:$0xff] }
 0x274   : > { %1184 = vmatpush.msrb.mxu3 %v987_v33  ;;  %1213 = vmatpush.msrb.mxu0 %v946_v52 }
 0x275   : > { %v889_v1 = vmax.f32 %v886_v61, 0.0  ;;  %1168 = vmatpush.msra.mxu2 %v937_v53 }
 0x276   : > { %1185 = vmatpush.msrb.mxu3 %v980_v36  ;;  %1214 = vmatpush.msrb.mxu0 %v939_v55 }
 0x277   : > { %1350 = vmatmul.msk.f32.gmra.mxu1 %vm818_vm1, %v889_v1  ;;  %v1050_v1 = vperm.slane %v2424_v63, 3 }
 0x278   : > { %1186 = vmatpush.msrb.mxu3 %v973_v39 }
 0x27a   : > { %1187 = vmatpush.msrb.mxu3 %v966_v42 }
 0x27c   : > { %1188 = vmatpush.msrb.mxu3 %v959_v45 }
 0x27e   : > { %1189 = vmatpush.msrb.mxu3 %v952_v48 }
 0x280   : > { %1190 = vmatpush.msrb.mxu3 %v945_v51 }
 0x282   : > { %1191 = vmatpush.msrb.mxu3 %v938_v54 }
 0x2ec   : > { %v925_v57 = vpop.f32.mrf.mxu1 }
 0x2ed   : > { %v926_v58 = vadd.f32 %v1407_v56, %v925_v57 }
 0x2ef   : > { %v931_v59 = vmax.f32 %v926_v58, 0.0 }
 0x2f1   : > { %1077 = vmatmul.f32.vlgmr.msrb.gmra.mxu2 %v931_v59  ;;  %1100 = vmatmul.f32.vlgmr.msra.gmra.mxu3 %v931_v59 }
 0x2f2   : > { %1123 = vmatmul.f32.vlgmr.msra.gmra.mxu0 %v931_v59  ;;  %1146 = vmatmul.f32.vlgmr.msra.gmra.mxu1 %v931_v59 }
 0x2f4   : > { %v928_v60 = vpop.f32.mrf.mxu1 }
 0x2f5   : > { %v929_v61 = vadd.f32 %v1407_v56, %v928_v60 }
 0x2f7   : > { %v932_v62 = vmax.f32 %v929_v61, 0.0 }
 0x2f9   : > { %1080 = vmatmul.f32.gmra.mxu2 %v932_v62  ;;  %1103 = vmatmul.f32.gmra.mxu3 %v932_v62 }
 0x2fa   : > { %1126 = vmatmul.f32.gmra.mxu0 %v932_v62  ;;  %1149 = vmatmul.f32.gmra.mxu1 %v932_v62 }
 0x301   : > { %1169 = vmatmul.f32.vlgmr.msra.gmra.mxu2 %v931_v59  ;;  %1192 = vmatmul.f32.vlgmr.msrb.gmra.mxu3 %v931_v59 }
 0x302   : > { %1215 = vmatmul.f32.vlgmr.msrb.gmra.mxu0 %v931_v59 }
 0x309   : > { %1172 = vmatmul.f32.gmra.mxu2 %v932_v62  ;;  %1195 = vmatmul.f32.gmra.mxu3 %v932_v62 }
 0x30a   : > { %1218 = vmatmul.f32.gmra.mxu0 %v932_v62 }
 0x36f   : > { %v1124_v2 = vpop.f32.mrf.mxu0  ;;  %v1147_v3 = vpop.f32.mrf.mxu1 }
 0x370   : > { %v1125_v4 = vadd.f32 %v1124_v2, %v1049_v0  ;;  %v1148_v5 = vadd.f32 %v1147_v3, %v1050_v1 }
 0x372   : > { %1408 = vtanh.f32 %v1125_v4 }
 0x373   : > { %1410 = vtanh.f32 %v1148_v5 }
 0x374   : > { %v1078_v8 = vpop.f32.mrf.mxu2  ;;  %v1101_v9 = vpop.f32.mrf.mxu3 }
 0x375   : > { %v1079_v10 = vadd.f32 %v1078_v8, %v1047_v6  ;;  %v1102_v11 = vadd.f32 %v1101_v9, %v1048_v7 }
 0x377   : > { %1412 = vtanh.f32 %v1079_v10  ;;  %v1127_v12 = vpop.f32.mrf.mxu0  ;;  %v1150_v13 = vpop.f32.mrf.mxu1 }
 0x378   : > { %v1409_v14 = vpop.eup %1408  ;;  %1414 = vtanh.f32 %v1102_v11  ;;  %v1128_v15 = vadd.f32 %v1127_v12, %v1049_v0  ;;  %v1151_v16 = vadd.f32 %v1150_v13, %v1050_v1 }
 0x379   : > { %v1411_v17 = vpop.eup %1410  ;;  %1238 = vst [vmem:[%s2432_s30 + $0x10] sm:$0xff] %v1409_v14 }
 0x37a   : > { %1239 = vst [vmem:[%s2432_s30 + $0x18] sm:$0xff] %v1411_v17  ;;  %1416 = vtanh.f32 %v1128_v15 }
 0x37b   : > { %1418 = vtanh.f32 %v1151_v16 }
 0x37c   : > { %v1081_v18 = vpop.f32.mrf.mxu2  ;;  %v1104_v19 = vpop.f32.mrf.mxu3 }
 0x37d   : > { %v1413_v21 = vpop.eup %1412  ;;  %v1082_v22 = vadd.f32 %v1081_v18, %v1047_v6  ;;  %v1105_v23 = vadd.f32 %v1104_v19, %v1048_v7 }
 0x37e   : > { %v1415_v24 = vpop.eup %1414  ;;  %1236 = vst [vmem:[%s2432_s30] sm:$0xff] %v1413_v21 }
 0x37f   : > { %1237 = vst [vmem:[%s2432_s30 + $0x8] sm:$0xff] %v1415_v24  ;;  %1420 = vtanh.f32 %v1082_v22  ;;  %v1216_v25 = vpop.f32.mrf.mxu0 }
 0x380   : > { %v1417_v26 = vpop.eup %1416  ;;  %1422 = vtanh.f32 %v1105_v23  ;;  %v1217_v27 = vadd.f32 %v1216_v25, %v1053_v20 }
 0x381   : > { %v1419_v28 = vpop.eup %1418  ;;  %1245 = vst [vmem:[%s2432_s30 + $0x48] sm:$0xff] %v1417_v26 }
 0x382   : > { %1246 = vst [vmem:[%s2432_s30 + $0x50] sm:$0xff] %v1419_v28  ;;  %1424 = vtanh.f32 %v1217_v27 }
 0x384   : > { %v1170_v31 = vpop.f32.mrf.mxu2  ;;  %v1193_v32 = vpop.f32.mrf.mxu3 }
 0x385   : > { %v1421_v33 = vpop.eup %1420  ;;  %v1171_v34 = vadd.f32 %v1170_v31, %v1051_v29  ;;  %v1194_v35 = vadd.f32 %v1193_v32, %v1052_v30 }
 0x386   : > { %v1423_v36 = vpop.eup %1422  ;;  %1243 = vst [vmem:[%s2432_s30 + $0x38] sm:$0xff] %v1421_v33 }
 0x387   : > { %1244 = vst [vmem:[%s2432_s30 + $0x40] sm:$0xff] %v1423_v36  ;;  %1426 = vtanh.f32 %v1171_v34  ;;  %v1219_v37 = vpop.f32.mrf.mxu0 }
 0x388   : > { %v1425_v38 = vpop.eup %1424  ;;  %1428 = vtanh.f32 %v1194_v35  ;;  %v1220_v39 = vadd.f32 %v1219_v37, %v1053_v20 }
 0x389   : > { %1242 = vst.msk [vmem:[%s2432_s30 + $0x30] sm:$0xff] %vm591_vm0, %v1425_v38 }
 0x38a   : > { %1430 = vtanh.f32 %v1220_v39 }
 0x38c   : > { %v1173_v40 = vpop.f32.mrf.mxu2  ;;  %v1196_v41 = vpop.f32.mrf.mxu3 }
 0x38d   : > { %v1427_v42 = vpop.eup %1426  ;;  %v1174_v43 = vadd.f32 %v1173_v40, %v1051_v29  ;;  %v1197_v44 = vadd.f32 %v1196_v41, %v1052_v30 }
 0x38e   : > { %v1429_v45 = vpop.eup %1428  ;;  %1240 = vst [vmem:[%s2432_s30 + $0x20] sm:$0xff] %v1427_v42 }
 0x38f   : > { %1241 = vst [vmem:[%s2432_s30 + $0x28] sm:$0xff] %v1429_v45  ;;  %1432 = vtanh.f32 %v1174_v43 }
 0x390   : > { %v1431_v46 = vpop.eup %1430  ;;  %1434 = vtanh.f32 %v1197_v44 }
 0x391   : > { %1249 = vst.msk [vmem:[%s2432_s30 + $0x68] sm:$0xff] %vm591_vm0, %v1431_v46 }
 0x393   : > { %1257 = sbr.rel (!%p1622_p5) target bundleno = 956 (0x3bc), region = 76 }
 0x395   : > { %v1433_v47 = vpop.eup %1432 }
 0x396   : > { %v1435_v48 = vpop.eup %1434  ;;  %1247 = vst [vmem:[%s2432_s30 + $0x58] sm:$0xff] %v1433_v47 }
 0x397   : > { %1248 = vst [vmem:[%s2432_s30 + $0x60] sm:$0xff] %v1435_v48 }
 0x398   : > { %s2550_s27 = smov (!%p1260_p11, %s1259_s27), 2 }
 0x399   : > { %s1353_s22 = smul.u32 56, %s2550_s27 }
 0x39b   : > { %s1264_s25 = ssub.s32 112, %s1353_s22 }
 0x39c   : > { %s1265_s19 = sshll.u32 %s1264_s25, 4 }
 0x39d   : > { %1266 = vsyncadd %s2455_s16, %s1265_s19  ;;  %p2461_p12 = scmp.ne.s32.totalorder %s1353_s22, 0  ;;  %s1362_s20 = smul.u32 112, %s1605_s29 }
 0x39e   : > { %s1272_s24 = sshll.u32 %s2432_s30, 4  ;;  %s2467_s18 = smul.u32 896, %s2550_s27  ;;  %s2472_s24 = int_to_ptr.vmem [resolvable:$true] %s1272_s24 }
 0x39f   : > { %s1270_s15 = scalar_lea.hbm %s2526_s13, %s1362_s20  ;;  %s1436_s22 = sshra.s32 %s2472_s24, 4  ;;  %s1437_s22 = int_to_ptr.vmem [resolvable:$true] %s1436_s22 }
 0x3a0   : > { %s1274_s23 = sshll.u32 %s1270_s15, 4  ;;  %s1438_s25 = sshrl.u32 %s2467_s18, 4  ;;  %s2474_s23 = int_to_ptr.hbm [resolvable:$true] %s1274_s23 }
 0x3a1   : > { %s1474_s29 = sshll.u32 %s1438_s25, 4  ;;  %s1441_s30 = sadd.s32 1, %s1438_s25 }
 0x3a2   : > { %p1440_p13 = scmp.ne.s32.totalorder %s1474_s29, %s2467_s18  ;;  %s1511_s19 = smov [#allocation2]  }
 0x3a3   : > { %s1447_s20 = scalar_lea.vmem %s1511_s19, 224 }
 0x3a4   : > { %s2552_s30 = smov (!%p1440_p13, %s1441_s30), %s1438_s25 }
 0x3a5   : > { %s1443_s27 = scalar_lea.vmem %s1437_s22, %s2552_s30 }
 0x3a6   : > { %p1444_p0 = scmp.ne.s32.totalorder %s1437_s22, %s1443_s27  ;;  %p1449_p3 = scmp.lt.s32.totalorder %s1447_s20, %s1443_s27 }
 0x3a8   : > { %p1445_p1 = pnand %p1444_p0, %p2461_p12 }
 0x3aa   : > { %p1446_p2 = pneg %p1445_p1 }
 0x3ac   : > { %p1451_p4 = pnand %p1449_p3, %p1446_p2 }
 0x3ae   : > { %1454 = shalt.err (!%p1451_p4)
}
 0x3af   : > { %s1455_s21 = sshra.s32 %s2474_s23, 4  ;;  %s1466_s22 = scalar_lea.hbm %s2526_s13, 168  ;;  %s1456_s21 = int_to_ptr.hbm [resolvable:$true] %s1455_s21 }
 0x3b0   : > { %s1462_s14 = scalar_lea.hbm %s1456_s21, %s2552_s30  ;;  %p1467_p9 = scmp.lt.s32.totalorder %s1456_s21, %s2526_s13 }
 0x3b1   : > { %p1463_p5 = scmp.ne.s32.totalorder %s1456_s21, %s1462_s14  ;;  %p1468_p10 = scmp.lt.s32.totalorder %s1466_s22, %s1462_s14 }
 0x3b3   : > { %p1464_p7 = pnand %p1463_p5, %p2461_p12  ;;  %p1469_p11 = por %p1468_p10, %p1467_p9 }
 0x3b5   : > { %p1465_p8 = pneg %p1464_p7 }
 0x3b7   : > { %p1470_p13 = pnand %p1469_p11, %p1465_p8 }
 0x3b9   : > { %1473 = shalt.err (!%p1470_p13)
}
 0x3ba   : > { %s1512_s27 = smov 896   ;;  %s1513_s30 = smov 56  }
 0x3bb   : > { %1280 = dma.vmem_to_hbm [thread:$0]  (%p2461_p12), %s2472_s24, %s2467_s18, %s2474_s23, %s2455_s16, %s1512_s27, %s1512_s27, %s1513_s30  }
 0x3bc PF: > { %s2542_s19 = sld [smem:[#allocation5_spill]]  ;;  %p1368_p0 = scmp.ge.s32.totalorder %s1509_s28, 2 }
 0x3be   : > { %p1365_p1 = pnand %p1368_p0, %p1626_p6 }
 0x3c0   : > { %p1366_p2 = pneg %p1365_p1 }
 0x3c2   : > { %s1289_s0 = sand.u32 1, %s2542_s19  }
 0x3c3   : > { %s1290_s21 = scalar_lea.sflag [#allocation3], %s1289_s0 }
 0x3c4   : > { %1492 = dma.done.wait (%p1366_p2), %s1290_s21, 1792  }
 0x3c5   : > { %1494 = vsyncadd (%p1366_p2), %s1290_s21, 4294965504  ;;  %s2544_s28 = sld [smem:[#allocation7_spill]]  ;;  %s2547_s25 = smov %s1501_s26 }
 0x3c6   : > { %s2545_s14 = sld [smem:[#allocation6_spill]] }
 0x3c7   : > { %s2546_s27 = sld [smem:[#allocation8_spill]] }
 0x3cb   : > { %p23_p3 = scmp.ge.s32.totalorder %s2544_s28, 4  }
 0x3cc   : > { %s2548_s26 = smov %s2545_s14 }
 0x3cd   :  { %25 = sbr.rel (!%p23_p3) target bundleno = 5 (0x5), region = 107 }
 0x3d2   :  { %1296 = vsyncpa [#allocation3], 1 }
 0x3d3   :  { %1298 = vsyncpa [#allocation3 + $0x1], 1 }

</bundles_post_ra>
